<compile_context>
chip_gen: v7x
topology: tpu7x:2x2x1
jax: 0.10.0
libtpu: 0.0.40
codegen_flags: <defaults>
</compile_context>

<pallas_src>
import functools

import jax
import jax.numpy as jnp
from jax.experimental import pallas as pl
from jax.experimental.pallas import tpu as pltpu


def _round_up(x, m):
    return (x + m - 1) // m * m


def _cdiv(a, b):
    return (a + b - 1) // b


# ---------------------------------------------------------------------------
# Pass 1: tiled conv GEMM (im2col) + per-channel sum / sum-of-squares.
# grid = (M tiles [parallel], N tiles [parallel], K tiles [arbitrary, inner]);
# acc_ref is a persistent f32 VMEM accumulator across the K axis.
# ---------------------------------------------------------------------------
def _conv_stats_kernel(patches_ref, w_ref, y_ref, stats_ref, acc_ref):
    k = pl.program_id(2)

    @pl.when(k == 0)
    def _():
        acc_ref[...] = jnp.zeros_like(acc_ref)

    acc_ref[...] += jnp.dot(patches_ref[...], w_ref[...],
                            preferred_element_type=jnp.float32)

    @pl.when(k == pl.num_programs(2) - 1)
    def _():
        y = acc_ref[...]                       # f32
        y_ref[...] = y.astype(y_ref.dtype)     # bf16 store (half HBM traffic)
        # Only rows 0 (sum) and 1 (sumsq) are consumed by the wrapper; the
        # remaining sublanes of the stats tile stay unwritten (no zero+concat).
        stats_ref[0, 0:1, :] = jnp.sum(y, axis=0, keepdims=True)
        stats_ref[0, 1:2, :] = jnp.sum(y * y, axis=0, keepdims=True)


# ---------------------------------------------------------------------------
# Pass 2: folded BatchNorm affine (+ optional ReLU), lane-dense streaming.
# Overwrites the bf16 conv output in place (input_output_aliases).
# ---------------------------------------------------------------------------
def _bn_relu_kernel(apply_relu, y_ref, scale_ref, shift_ref, o_ref):
    out = y_ref[...].astype(jnp.float32) * scale_ref[...] + shift_ref[...]
    if apply_relu:
        out = jnp.maximum(out, 0.0)
    o_ref[...] = out.astype(o_ref.dtype)


def conv_bn_relu(x_nchw, weight, bias, gamma, beta, *,
                 stride=1, padding=1, eps=1e-5, relu=True, out_format="NCHW"):
    """x_nchw: (N, C_in, H, W); weight: (C_out, C_in, kh, kw).

    Matches PyTorch Conv2d + BatchNorm2d (training-mode, biased batch stats)
    + ReLU forward. The conv bias cancels exactly under training-mode BN and
    is not applied (kept in the signature for API parity).
    """
    del bias  # cancels exactly under training-mode BatchNorm
    n, c_in, h, w = x_nchw.shape
    c_out, _, kh, kw = weight.shape
    h_out = (h + 2 * padding - kh) // stride + 1
    w_out = (w + 2 * padding - kw) // stride + 1
    m_rows = n * h_out * w_out
    k_dim = kh * kw * c_in

    # ---- tile selection (lane-dense, VMEM-safe on v5e/v6e/v7x) -------------
    # M: largest 128-multiple tile that keeps >= 2 tiles (megacore / 2 TCs),
    # capped at 512 so double-buffered tiles stay well under v7x's 64 MiB.
    if m_rows >= 4096:
        tm = 512
    elif m_rows >= 512:
        tm = 256
    else:
        tm = max(128, _round_up(m_rows, 128))
    m_pad = _round_up(m_rows, tm)
    n_m = m_pad // tm

    # K: divisor-balanced tk (<= 512, 128-aligned) -> minimal zero padding.
    k_pad0 = _round_up(k_dim, 128)
    n_k = _cdiv(k_pad0, 512)
    tk = _round_up(_cdiv(k_pad0, n_k), 128)
    k_pad = n_k * tk

    # N (C_out): keep full lane-dense width up to 1024 channels, then tile so
    # rhs / accumulator / output tiles stay bounded in VMEM.
    c_pad0 = _round_up(c_out, 128)
    if c_pad0 > 1024:
        n_n = _cdiv(c_pad0, 512)
        tn = _round_up(_cdiv(c_pad0, n_n), 128)
    else:
        n_n = 1
        tn = c_pad0
    c_pad = n_n * tn

    # ---- glue: NCHW -> NHWC (bf16!), pad, im2col via concat ----------------
    # bf16 from the start halves the read+write bytes of this pure-streaming
    # glue; the kernel consumes bf16 anyway (f32 MXU accumulation).
    # TODO(synk): implicit GEMM (index_map-selected shifted windows of the
    # padded NHWC input, K grid axis over the kh*kw taps) would remove this
    # kh*kw-duplicated patches materialization entirely.
    x = jnp.transpose(x_nchw, (0, 2, 3, 1)).astype(jnp.bfloat16)   # NHWC
    x = jnp.pad(x, ((0, 0), (padding, padding), (padding, padding), (0, 0)))
    cols = []
    for i in range(kh):
        for j in range(kw):
            cols.append(x[:, i:i + stride * h_out:stride,
                          j:j + stride * w_out:stride, :])
    patches = jnp.concatenate(cols, axis=-1).reshape(m_rows, k_dim)
    patches = jnp.pad(patches, ((0, m_pad - m_rows), (0, k_pad - k_dim)))

    # weight (C_out, C_in, kh, kw) -> (kh, kw, C_in, C_out) -> (K, C_out), bf16
    w_mat = jnp.transpose(weight, (2, 3, 1, 0)).reshape(k_dim, c_out)
    w_mat = jnp.pad(w_mat.astype(jnp.bfloat16),
                    ((0, k_pad - k_dim), (0, c_pad - c_out)))

    # ---- pass 1: conv GEMM + per-tile channel sum / sumsq ------------------
    lhs_idx = lambda i, j, k: (i, k)
    lhs_spec = pl.BlockSpec((tm, tk), lhs_idx)
    # Deeper lhs pipelining for the memory-bound (small-C) regime, when there
    # are enough grid steps to pipeline across (sweep 2 vs 3 per perf review).
    if c_pad <= 256 and n_m * n_n * n_k >= 8 and hasattr(pl, "Buffered"):
        try:
            lhs_spec = pl.BlockSpec((tm, tk), lhs_idx,
                                    pipeline_mode=pl.Buffered(3))
        except TypeError:
            lhs_spec = pl.BlockSpec((tm, tk), lhs_idx)

    y_conv, stats = pl.pallas_call(
        _conv_stats_kernel,
        out_shape=(jax.ShapeDtypeStruct((m_pad, c_pad), jnp.bfloat16),
                   jax.ShapeDtypeStruct((n_m, 8, c_pad), jnp.float32)),
        grid=(n_m, n_n, n_k),
        in_specs=[
            lhs_spec,
            pl.BlockSpec((tk, tn), lambda i, j, k: (k, j)),
        ],
        out_specs=(
            pl.BlockSpec((tm, tn), lambda i, j, k: (i, j)),
            pl.BlockSpec((1, 8, tn), lambda i, j, k: (i, 0, j)),
        ),
        scratch_shapes=[pltpu.VMEM((tm, tn), jnp.float32)],
        compiler_params=pltpu.CompilerParams(
            dimension_semantics=("parallel", "parallel", "arbitrary"),
            vmem_limit_bytes=64 * 1024 * 1024),
    )(patches, w_mat)

    # ---- tiny glue: combine partial sums, fold BN into (scale, shift) ------
    # Padded rows are all-zero (no conv bias), so they contribute nothing to
    # the sums; divide by the true row count m_rows.
    ch_sum = jnp.sum(stats[:, 0, :], axis=0)               # (c_pad,)
    ch_sumsq = jnp.sum(stats[:, 1, :], axis=0)
    mean = ch_sum / m_rows
    var = jnp.maximum(ch_sumsq / m_rows - mean * mean, 0.0)   # biased variance
    inv_std = jax.lax.rsqrt(var + eps)
    gamma_p = jnp.pad(gamma.astype(jnp.float32), (0, c_pad - c_out))
    beta_p = jnp.pad(beta.astype(jnp.float32), (0, c_pad - c_out))
    scale = (gamma_p * inv_std).reshape(1, c_pad)
    shift = (beta_p - mean * gamma_p * inv_std).reshape(1, c_pad)
    # TODO(synk): BatchNorm2d running_mean/running_var updates are not
    # produced (forward-only, training-mode batch statistics).

    # ---- pass 2: affine + ReLU, lane-dense streaming, in-place over y_conv -
    tm2 = tm
    for cand in (1024, 512):
        if m_pad % cand == 0 and m_pad // cand >= 2:
            tm2 = cand
            break
    n_m2 = m_pad // tm2

    out_flat = pl.pallas_call(
        functools.partial(_bn_relu_kernel, relu),
        out_shape=jax.ShapeDtypeStruct((m_pad, c_pad), jnp.bfloat16),
        grid=(n_m2, n_n),
        in_specs=[
            pl.BlockSpec((tm2, tn), lambda i, j: (i, j)),
            pl.BlockSpec((1, tn), lambda i, j: (0, j)),
            pl.BlockSpec((1, tn), lambda i, j: (0, j)),
        ],
        out_specs=pl.BlockSpec((tm2, tn), lambda i, j: (i, j)),
        input_output_aliases={0: 0},     # overwrite y_conv in place
        compiler_params=pltpu.CompilerParams(
            dimension_semantics=("parallel", "parallel"),
            vmem_limit_bytes=64 * 1024 * 1024),
    )(y_conv, scale, shift)

    # ---- glue: (M_pad, C_pad) -> (M, C_out) -> NHWC (-> NCHW) --------------
    out = out_flat[:m_rows, :c_out].reshape(n, h_out, w_out, c_out)
    if out_format == "NHWC":
        # Preferred: avoids a full extra HBM round trip for the layout change.
        return out.astype(x_nchw.dtype)
    return jnp.transpose(out, (0, 3, 1, 2)).astype(x_nchw.dtype)


if __name__ == "__main__":
    key = jax.random.PRNGKey(0)
    k_x, k_w, k_b = jax.random.split(key, 3)

    # ConvBnRelu(4, 8, stride=1, kernel_size=3, padding=1)
    N, C_IN, H, W = 2, 4, 16, 16
    C_OUT, KH, KW = 8, 3, 3

    x = jax.random.normal(k_x, (N, C_IN, H, W), dtype=jnp.float32)

    fan_in = C_IN * KH * KW
    bound = 1.0 / (fan_in ** 0.5)
    weight = jax.random.uniform(k_w, (C_OUT, C_IN, KH, KW),
                                minval=-bound, maxval=bound, dtype=jnp.float32)
    bias = jax.random.uniform(k_b, (C_OUT,), minval=-bound, maxval=bound,
                              dtype=jnp.float32)
    gamma = jnp.ones((C_OUT,), jnp.float32)   # BatchNorm2d weight init
    beta = jnp.zeros((C_OUT,), jnp.float32)   # BatchNorm2d bias init

    fn = jax.jit(functools.partial(conv_bn_relu, stride=1, padding=1,
                                   eps=1e-5, relu=True, out_format="NCHW"))
    out = fn(x, weight, bias, gamma, beta)
    out = jax.block_until_ready(out)
    assert out.shape == (N, C_OUT, H, W)

    # Pure-JAX f32 reference (Conv2d + training-mode BatchNorm2d + ReLU).
    ref_conv = jax.lax.conv_general_dilated(
        x, weight, window_strides=(1, 1), padding=((1, 1), (1, 1)),
        dimension_numbers=("NCHW", "OIHW", "NCHW"),
        precision=jax.lax.Precision.HIGHEST)
    ref_conv = ref_conv + bias.reshape(1, -1, 1, 1)
    mu = jnp.mean(ref_conv, axis=(0, 2, 3), keepdims=True)
    va = jnp.var(ref_conv, axis=(0, 2, 3), keepdims=True)   # biased
    ref = (gamma.reshape(1, -1, 1, 1) * (ref_conv - mu)
           * jax.lax.rsqrt(va + 1e-5) + beta.reshape(1, -1, 1, 1))
    ref = jnp.maximum(ref, 0.0)

    # bf16 MXU feed + bf16 intermediate/output storage vs a HIGHEST-precision
    # f32 reference -> allow a few 1e-2 of absolute error on normalized values.
    err = jnp.abs(out - ref)
    max_err = float(jnp.max(err))
    mean_err = float(jnp.mean(err))
    assert max_err < 7.5e-2, f"max abs err {max_err}"
    assert mean_err < 1e-2, f"mean abs err {mean_err}"

    print("KERNEL_OK")
</pallas_src>

<mosaic_0001>
module attributes {stable_mosaic.version = 11 : i64} {
  func.func @_conv_stats_kernel(%arg0: i32, %arg1: i32, %arg2: i32, %arg3: memref<256x128xbf16, #tpu.memory_space<vmem>>, %arg4: memref<128x128xbf16, #tpu.memory_space<vmem>>, %arg5: memref<256x128xbf16, #tpu.memory_space<vmem>>, %arg6: memref<1x8x128xf32, #tpu.memory_space<vmem>>, %arg7: memref<256x128xf32, #tpu.memory_space<vmem>>) attributes {dimension_semantics = [#tpu.dimension_semantics<parallel>, #tpu.dimension_semantics<parallel>, #tpu.dimension_semantics<arbitrary>], iteration_bounds = array<i64: 2, 1, 1>, scalar_prefetch = 0 : i64, scratch_operands = 1 : i64, tpu.core_type = #tpu.core_type<tc>, window_params = [{transform_indices = @transform_0, window_bounds = array<i64: 256, 128>}, {transform_indices = @transform_1, window_bounds = array<i64: 128, 128>}, {transform_indices = @transform_2, window_bounds = array<i64: 256, 128>}, {transform_indices = @transform_3, window_bounds = array<i64: 1, 8, 128>}]} {
    %c0_i32 = arith.constant 0 : i32
    %0 = arith.cmpi eq, %arg2, %c0_i32 : i32
    %1 = arith.extui %0 : i1 to i32
    %c0_i32_0 = arith.constant 0 : i32
    %2 = arith.cmpi ne, %1, %c0_i32_0 : i32
    scf.if %2 {
      %cst_10 = arith.constant 0.000000e+00 : f32
      %12 = vector.broadcast %cst_10 : f32 to vector<256x128xf32>
      %c0_11 = arith.constant 0 : index
      %c0_12 = arith.constant 0 : index
      %13 = vector.load %arg7[%c0_11, %c0_12] : memref<256x128xf32, #tpu.memory_space<vmem>>, vector<256x128xf32>
      tpu.vector_store %arg7[%c0_11, %c0_12], %12 {strides = array<i32>} : memref<256x128xf32, #tpu.memory_space<vmem>>, vector<256x128xf32>,
    } else {
    }
    %c0 = arith.constant 0 : index
    %c0_1 = arith.constant 0 : index
    %3 = vector.load %arg7[%c0, %c0_1] : memref<256x128xf32, #tpu.memory_space<vmem>>, vector<256x128xf32>
    %c0_2 = arith.constant 0 : index
    %c0_3 = arith.constant 0 : index
    %4 = vector.load %arg3[%c0_2, %c0_3] : memref<256x128xbf16, #tpu.memory_space<vmem>>, vector<256x128xbf16>
    %c0_4 = arith.constant 0 : index
    %c0_5 = arith.constant 0 : index
    %5 = vector.load %arg4[%c0_4, %c0_5] : memref<128x128xbf16, #tpu.memory_space<vmem>>, vector<128x128xbf16>
    %cst = arith.constant dense<0.000000e+00> : vector<256x128xf32>
    %6 = tpu.matmul %4, %5, %cst {dimension_numbers = #tpu.dot_dimension_numbers<[1], [0], [0], [1], [0, 0, 1, 1], [], []>} : vector<256x128xbf16>, vector<128x128xbf16>, vector<256x128xf32> -> vector<256x128xf32>
    %7 = arith.addf %3, %6 : vector<256x128xf32>
    %c0_6 = arith.constant 0 : index
    %c0_7 = arith.constant 0 : index
    %8 = vector.load %arg7[%c0_6, %c0_7] : memref<256x128xf32, #tpu.memory_space<vmem>>, vector<256x128xf32>
    tpu.vector_store %arg7[%c0_6, %c0_7], %7 {strides = array<i32>} : memref<256x128xf32, #tpu.memory_space<vmem>>, vector<256x128xf32>,
    %c0_i32_8 = arith.constant 0 : i32
    %9 = arith.cmpi eq, %arg2, %c0_i32_8 : i32
    %10 = arith.extui %9 : i1 to i32
    %c0_i32_9 = arith.constant 0 : i32
    %11 = arith.cmpi ne, %10, %c0_i32_9 : i32
    scf.if %11 {
      %c0_10 = arith.constant 0 : index
      %c0_11 = arith.constant 0 : index
      %12 = vector.load %arg7[%c0_10, %c0_11] : memref<256x128xf32, #tpu.memory_space<vmem>>, vector<256x128xf32>
      %13 = arith.truncf %12 : vector<256x128xf32> to vector<256x128xbf16>
      %c0_12 = arith.constant 0 : index
      %c0_13 = arith.constant 0 : index
      %14 = vector.load %arg5[%c0_12, %c0_13] : memref<256x128xbf16, #tpu.memory_space<vmem>>, vector<256x128xbf16>
      tpu.vector_store %arg5[%c0_12, %c0_13], %13 {strides = array<i32>} : memref<256x128xbf16, #tpu.memory_space<vmem>>, vector<256x128xbf16>,
      %cst_14 = arith.constant dense<0.000000e+00> : vector<128xf32>
      %15 = vector.multi_reduction <add>, %12, %cst_14 [0] : vector<256x128xf32> to vector<128xf32>
      %16 = vector.shape_cast %15 : vector<128xf32> to vector<1x128xf32>
      %c0_15 = arith.constant 0 : index
      %c0_16 = arith.constant 0 : index
      %c0_17 = arith.constant 0 : index
      %17 = vector.load %arg6[%c0_15, %c0_16, %c0_17] : memref<1x8x128xf32, #tpu.memory_space<vmem>>, vector<1x1x128xf32>
      %18 = vector.shape_cast %17 : vector<1x1x128xf32> to vector<1x128xf32>
      %19 = vector.shape_cast %16 : vector<1x128xf32> to vector<1x1x128xf32>
      tpu.vector_store %arg6[%c0_15, %c0_16, %c0_17], %19 {strides = array<i32>} : memref<1x8x128xf32, #tpu.memory_space<vmem>>, vector<1x1x128xf32>,
      %20 = arith.mulf %12, %12 : vector<256x128xf32>
      %cst_18 = arith.constant dense<0.000000e+00> : vector<128xf32>
      %21 = vector.multi_reduction <add>, %20, %cst_18 [0] : vector<256x128xf32> to vector<128xf32>
      %22 = vector.shape_cast %21 : vector<128xf32> to vector<1x128xf32>
      %c0_19 = arith.constant 0 : index
      %c1 = arith.constant 1 : index
      %c0_20 = arith.constant 0 : index
      %23 = vector.load %arg6[%c0_19, %c1, %c0_20] : memref<1x8x128xf32, #tpu.memory_space<vmem>>, vector<1x1x128xf32>
      %24 = vector.shape_cast %23 : vector<1x1x128xf32> to vector<1x128xf32>
      %25 = vector.shape_cast %22 : vector<1x128xf32> to vector<1x1x128xf32>
      tpu.vector_store %arg6[%c0_19, %c1, %c0_20], %25 {strides = array<i32>} : memref<1x8x128xf32, #tpu.memory_space<vmem>>, vector<1x1x128xf32>,
    } else {
    }
    return
  }
  func.func @transform_0(%arg0: i32, %arg1: i32, %arg2: i32) -> (i32, i32) {
    %c0_i32 = arith.constant 0 : i32
    return %arg0, %arg2 : i32, i32
  }
  func.func @transform_1(%arg0: i32, %arg1: i32, %arg2: i32) -> (i32, i32) {
    %c0_i32 = arith.constant 0 : i32
    return %arg2, %arg1 : i32, i32
  }
  func.func @transform_2(%arg0: i32, %arg1: i32, %arg2: i32) -> (i32, i32) {
    %c0_i32 = arith.constant 0 : i32
    return %arg0, %arg1 : i32, i32
  }
  func.func @transform_3(%arg0: i32, %arg1: i32, %arg2: i32) -> (i32, i32, i32) {
    %c0_i32 = arith.constant 0 : i32
    %c0_i32_0 = arith.constant 0 : i32
    return %arg0, %c0_i32, %arg1 : i32, i32, i32
  }
}

module attributes {stable_mosaic.version = 11 : i64} {
  func.func @_bn_relu_kernel(%arg0: i32, %arg1: i32, %arg2: memref<256x128xbf16, #tpu.memory_space<vmem>>, %arg3: memref<1x128xf32, #tpu.memory_space<vmem>>, %arg4: memref<1x128xf32, #tpu.memory_space<vmem>>, %arg5: memref<256x128xbf16, #tpu.memory_space<vmem>>) attributes {dimension_semantics = [#tpu.dimension_semantics<parallel>, #tpu.dimension_semantics<parallel>], iteration_bounds = array<i64: 2, 1>, scalar_prefetch = 0 : i64, scratch_operands = 0 : i64, tpu.core_type = #tpu.core_type<tc>, window_params = [{transform_indices = @transform_0, window_bounds = array<i64: 256, 128>}, {transform_indices = @transform_1, window_bounds = array<i64: 1, 128>}, {transform_indices = @transform_2, window_bounds = array<i64: 1, 128>}, {transform_indices = @transform_3, window_bounds = array<i64: 256, 128>}]} {
    %c0 = arith.constant 0 : index
    %c0_0 = arith.constant 0 : index
    %0 = vector.load %arg2[%c0, %c0_0] : memref<256x128xbf16, #tpu.memory_space<vmem>>, vector<256x128xbf16>
    %1 = arith.extf %0 : vector<256x128xbf16> to vector<256x128xf32>
    %c0_1 = arith.constant 0 : index
    %c0_2 = arith.constant 0 : index
    %2 = vector.load %arg3[%c0_1, %c0_2] : memref<1x128xf32, #tpu.memory_space<vmem>>, vector<1x128xf32>
    %3 = vector.broadcast %2 : vector<1x128xf32> to vector<256x128xf32>
    %4 = arith.mulf %1, %3 : vector<256x128xf32>
    %c0_3 = arith.constant 0 : index
    %c0_4 = arith.constant 0 : index
    %5 = vector.load %arg4[%c0_3, %c0_4] : memref<1x128xf32, #tpu.memory_space<vmem>>, vector<1x128xf32>
    %6 = vector.broadcast %5 : vector<1x128xf32> to vector<256x128xf32>
    %7 = arith.addf %4, %6 : vector<256x128xf32>
    %cst = arith.constant 0.000000e+00 : f32
    %8 = vector.broadcast %cst : f32 to vector<256x128xf32>
    %9 = arith.maximumf %7, %8 : vector<256x128xf32>
    %10 = arith.truncf %9 : vector<256x128xf32> to vector<256x128xbf16>
    %c0_5 = arith.constant 0 : index
    %c0_6 = arith.constant 0 : index
    %11 = vector.load %arg5[%c0_5, %c0_6] : memref<256x128xbf16, #tpu.memory_space<vmem>>, vector<256x128xbf16>
    tpu.vector_store %arg5[%c0_5, %c0_6], %10 {strides = array<i32>} : memref<256x128xbf16, #tpu.memory_space<vmem>>, vector<256x128xbf16>,
    return
  }
  func.func @transform_0(%arg0: i32, %arg1: i32) -> (i32, i32) {
    %c0_i32 = arith.constant 0 : i32
    return %arg0, %arg1 : i32, i32
  }
  func.func @transform_1(%arg0: i32, %arg1: i32) -> (i32, i32) {
    %c0_i32 = arith.constant 0 : i32
    %c0_i32_0 = arith.constant 0 : i32
    return %c0_i32, %arg1 : i32, i32
  }
  func.func @transform_2(%arg0: i32, %arg1: i32) -> (i32, i32) {
    %c0_i32 = arith.constant 0 : i32
    %c0_i32_0 = arith.constant 0 : i32
    return %c0_i32, %arg1 : i32, i32
  }
  func.func @transform_3(%arg0: i32, %arg1: i32) -> (i32, i32) {
    %c0_i32 = arith.constant 0 : i32
    return %arg0, %arg1 : i32, i32
  }
}

</mosaic_0001>

<bundles_post_ra>
// kernel: conv_bn_relu.3
= control target key start
LH: loop header
LB: loop body
LE: loop exit
PB: predicated region body
PF: predicated region fallthrough
CT: control target
= control target key end

     0   :  { %8 = vsyncpa [#allocation3], 0  ;;  %s1612_s0 = inlined_call_operand.hbm [shape: bf16[512,128], index: 0, kind: input, shape index: {}, may-alias: {0,3}]   ;;  %s1613_s1 = inlined_call_operand.hbm [shape: f32[1,128], index: 1, kind: input, shape index: {}]   ;;  %s1614_s2 = inlined_call_operand.hbm [shape: f32[1,128], index: 2, kind: input, shape index: {}]   ;;  %s1615_s3 = inlined_call_operand.hbm [shape: bf16[512,128], index: 3, kind: output, shape index: {}, may-alias: {0,3}]  }
   0x1   :  { %10 = vsyncpa [#allocation3 + $0x1], 0 }
   0x2   :  { %11 = vsyncpa [#allocation6], 0 }
   0x3   :  { %12 = vsyncpa [#allocation4], 0 }
   0x4   :  { %14 = vsyncpa [#allocation4 + $0x1], 0  ;;  %s1254_s12 = smov 0   ;;  %s1256_s13 = smov 0  }
   0x5   :  { %s1258_s14 = smov 0   ;;  %s1260_s15 = smov 0  }
   0x6   :  { %s1262_s16 = smov 0   ;;  %s1264_s17 = smov 0  }
   0x7 LB: > { %s704_s18 = sadd.s32 4294967295, %s1224_s17   ;;  %s705_s19 = sadd.s32 4294967294, %s1224_s17   ;;  %s1224_s17 = sphi %s1264_s17, %s20_s17   ;;  %s1220_s16 = sphi %s1262_s16, %s1641_s16   ;;  %s1216_s15 = sphi %s1260_s15, %s1640_s15   ;;  %s1212_s14 = sphi %s1258_s14, %s1639_s14   ;;  %s1208_s13 = sphi %s1256_s13, %s1638_s13   ;;  %s1204_s12 = sphi %s1254_s12, %s1637_s12  }
   0x8   : > { %s41_s20 = sadd.s32 1, %s1212_s14  ;;  %p48_p0 = scmp.ne.s32.totalorder %s1212_s14, %s1208_s13 }
   0x9   : > { %p49_p1 = scmp.eq.s32.totalorder %s1224_s17, 0  ;;  %p54_p2 = scmp.ne.s32.totalorder %s1208_s13, %s1204_s12 }
   0xa   : > { %p1292_p3 = scmp.eq.s32.totalorder %s704_s18, 0  ;;  %p132_p4 = scmp.eq.s32.totalorder %s704_s18, 1 }
   0xb   : > { %p1296_p5 = por %p49_p1, %p48_p0  ;;  %p138_p6 = scmp.eq.s32.totalorder %s705_s19, 1 }
   0xc   : > { %s1622_s21 = scalar_select %p1292_p3, 1, 0 }
   0xd   : > { %p1302_p7 = por %p1292_p3, %p54_p2  ;;  %p1306_p8 = por %p132_p4, %p48_p0 }
   0xe   : > { %p1310_p9 = por %p138_p6, %p54_p2  ;;  %p706_p10 = scmp.ge.s32.totalorder %s1224_s17, 1 }
   0xf   : > { %s1624_s23 = scalar_select %p1302_p7, 1, 0 }
  0x10   : > { %s1625_s24 = scalar_select %p1306_p8, 1, 0 }
  0x11   : > { %s1626_s25 = scalar_select %p1310_p9, 1, 0 }
  0x12   : > { %p145_p11 = scmp.lt.s32.totalorder %s1224_s17, 3  ;;  %s1226_s27 = smov [#allocation5]  }
  0x13   : > { %s160_s28 = sshll.u32 %s1226_s27, 4  ;;  %p994_p1 = scmp.lt.s32.totalorder %s1224_s17, 2  ;;  %s161_s28 = int_to_ptr.vmem [resolvable:$true] %s160_s28 }
  0x14   : > { %p1317_p13 = pnand %p706_p10, %p145_p11  ;;  %s1227_s30 = smov [#allocation7]  }
  0x15   : > { %p1326_p4 = pnand %p994_p1, %p1296_p5  ;;  %s173_s4 = sshll.u32 %s1227_s30, 4  ;;  %s1336_s4 = int_to_ptr.vmem [resolvable:$true] %s173_s4 }
  0x16   : > { %s1627_s26 = scalar_select %p1317_p13, 1, 0 }
  0x17   : > { %p977_p0 = pneg %p1317_p13  ;;  %s1052_s8 = scalar_lea.hbm %s1613_s1, 16 }
  0x18   : > { %s1628_s29 = scalar_select %p1326_p4, 1, 0 }
  0x19   : > { %p1332_p2 = pnand %p977_p0, %p1292_p3  ;;  %p1053_p5 = scmp.ne.s32.totalorder %s1613_s1, %s1052_s8 }
  0x1a   : > { %p1059_p1 = scmp.lt.u32.totalorder %s1052_s8, %s1613_s1 }
  0x1b   : > { %p1054_p6 = pneg %p1332_p2 }
  0x1d   : > { %p1055_p10 = pnand %p1054_p6, %p1053_p5 }
  0x1f   : > { %p1056_p11 = pneg %p1055_p10 }
  0x21   : > { %p1061_p0 = pnand %p1059_p1, %p1056_p11 }
  0x23   : > { %1064 = shalt.err (!%p1061_p0)
}
  0x24   : > { %s1065_s19 = scalar_lea.vmem %s161_s28, 16  ;;  %s1072_s22 = scalar_lea.vmem %s161_s28, 32 }
  0x25   : > { %p1066_p12 = scmp.ne.s32.totalorder %s161_s28, %s1065_s19  ;;  %p1073_p3 = scmp.lt.s32.totalorder %s161_s28, %s161_s28 }
  0x26   : > { %p1074_p7 = scmp.lt.s32.totalorder %s1072_s22, %s1065_s19 }
  0x27   : > { %p1068_p9 = pnand %p1066_p12, %p1054_p6 }
  0x28   : > { %p1075_p13 = por %p1074_p7, %p1073_p3 }
  0x29   : > { %p1069_p8 = pneg %p1068_p9 }
  0x2b   : > { %p1076_p4 = pnand %p1075_p13, %p1069_p8 }
  0x2d   : > { %1079 = shalt.err (!%p1076_p4)
}
  0x2e   : > { %980 = dma.hbm_to_vmem [thread:$0]  (!%p1332_p2), %s1613_s1, 16, %s161_s28, [#allocation6]  }
  0x2f   : > { %s1080_s8 = scalar_lea.hbm %s1614_s2, 16 }
  0x30   : > { %p1081_p9 = scmp.ne.s32.totalorder %s1614_s2, %s1080_s8  ;;  %p1087_p8 = scmp.lt.u32.totalorder %s1080_s8, %s1614_s2 }
  0x32   : > { %p1083_p3 = pnand %p1081_p9, %p1054_p6 }
  0x34   : > { %p1084_p7 = pneg %p1083_p3 }
  0x36   : > { %p1089_p12 = pnand %p1087_p8, %p1084_p7 }
  0x38   : > { %1092 = shalt.err (!%p1089_p12)
}
  0x39   : > { %s1093_s28 = scalar_lea.vmem %s1336_s4, 16  ;;  %s1100_s19 = scalar_lea.vmem %s1336_s4, 32 }
  0x3a   : > { %p1094_p13 = scmp.ne.s32.totalorder %s1336_s4, %s1093_s28  ;;  %p1101_p10 = scmp.lt.s32.totalorder %s1336_s4, %s1336_s4 }
  0x3b   : > { %p1102_p11 = scmp.lt.s32.totalorder %s1100_s19, %s1093_s28 }
  0x3c   : > { %p1096_p4 = pnand %p1094_p13, %p1054_p6 }
  0x3d   : > { %p1103_p1 = por %p1102_p11, %p1101_p10 }
  0x3e   : > { %p1097_p5 = pneg %p1096_p4 }
  0x40   : > { %p1104_p0 = pnand %p1103_p1, %p1097_p5 }
  0x42   : > { %1107 = shalt.err (!%p1104_p0)
}
  0x43   : > { %983 = dma.hbm_to_vmem [thread:$0]  (!%p1332_p2), %s1614_s2, 16, %s1336_s4, [#allocation6]  }
  0x44   : > { %s32_s30 = sadd.s32 1, %s1220_s16  ;;  %s184_s6 = sand.u32 1, %s1212_s14  }
  0x45   : > { %p34_p6 = scmp.ge.s32.totalorder %s32_s30, 2  ;;  %s710_s7 = sshll.u32 %s184_s6, 7 }
  0x46   : > { %s757_s8 = sshll.u32 %s1220_s16, 11  ;;  %s188_s4 = scalar_lea.vmem [#allocation2], %s710_s7 }
  0x47   : > { %s1643_s30 = smov (%p34_p6, %s32_s30), 0  ;;  %s1394_s10 = scalar_lea.hbm %s1612_s0, %s757_s8 }
  0x48   : > { %s36_s11 = ssub.s32 %s1220_s16, %s1643_s30  ;;  %s196_s18 = sshll.u32 %s188_s4, 4  ;;  %s1398_s18 = int_to_ptr.vmem [resolvable:$true] %s196_s18 }
  0x49   : > { %p39_p2 = scmp.eq.s32.totalorder %s36_s11, 0  ;;  %s1405_s19 = scalar_lea.sflag [#allocation3], %s184_s6 }
  0x4a   : > { %s1108_s22 = scalar_lea.hbm %s1394_s10, 2048  ;;  %p1630_p3 = scmp.ne.s32.totalorder %s1628_s29, 0 }
  0x4b   : > { %s1403_s28 = scalar_select %p39_p2, %s1212_s14, %s41_s20  }
  0x4c   : > { %p1109_p9 = scmp.ne.s32.totalorder %s1394_s10, %s1108_s22  ;;  %p1110_p7 = pneg %p1630_p3 }
  0x4d   : > { %s1113_s7 = scalar_lea.hbm %s1612_s0, 4096  ;;  %p1114_p13 = scmp.lt.u32.totalorder %s1394_s10, %s1612_s0 }
  0x4e   : > { %p1111_p8 = pnand %p1110_p7, %p1109_p9  ;;  %p1115_p4 = scmp.lt.u32.totalorder %s1113_s7, %s1108_s22 }
  0x4f   : > { %p1117_p10 = scmp.lt.u32.totalorder %s1108_s22, %s1394_s10 }
  0x50   : > { %p1112_p12 = pneg %p1111_p8  ;;  %p1116_p5 = por %p1115_p4, %p1114_p13 }
  0x52   : > { %p1118_p11 = por %p1117_p10, %p1116_p5 }
  0x54   : > { %p1119_p1 = pnand %p1118_p11, %p1112_p12 }
  0x56   : > { %1122 = shalt.err (!%p1119_p1)
}
  0x57   : > { %s1123_s20 = scalar_lea.vmem %s1398_s18, 2048  ;;  %s1228_s6 = smov [#allocation2]  }
  0x58   : > { %p1124_p0 = scmp.ne.s32.totalorder %s1398_s18, %s1123_s20  ;;  %s1128_s11 = sshll.u32 %s1228_s6, 4  ;;  %s1129_s11 = int_to_ptr.vmem [resolvable:$false] %s1128_s11 }
  0x59   : > { %s1130_s4 = scalar_lea.vmem %s1129_s11, 4096  ;;  %p1131_p9 = scmp.lt.s32.totalorder %s1398_s18, %s1129_s11 }
  0x5a   : > { %p1126_p6 = pnand %p1124_p0, %p1110_p7  ;;  %p1132_p8 = scmp.lt.s32.totalorder %s1130_s4, %s1123_s20 }
  0x5c   : > { %p1127_p2 = pneg %p1126_p6  ;;  %p1133_p13 = por %p1132_p8, %p1131_p9 }
  0x5e   : > { %p1134_p4 = pnand %p1133_p13, %p1127_p2 }
  0x60   : > { %1137 = shalt.err (!%p1134_p4)
}
  0x61   : > { %s1229_s22 = smov 64   ;;  %s1230_s27 = smov 4  }
  0x62   : > { %987 = dma.hbm_to_vmem [thread:$0]  (!%p1630_p3), %s1394_s10, 2048, %s1398_s18, %s1405_s19, %s1229_s22, %s1229_s22, %s1230_s27  }
  0x63   : > { %p1631_p7 = scmp.ne.s32.totalorder %s1627_s26, 0 }
  0x64   : > { %s1436_s8 = sand.u32 (!%p1631_p7), 1, %s1208_s13   ;;  %p1632_p12 = scmp.ne.s32.totalorder (!%p1631_p7), %s1624_s23, 0 }
  0x65   : > { %208 = sbr.rel (%p1631_p7) target bundleno = 169 (0xa9), region = 32  ;;  %s714_s7 = sshll.u32 (!%p1631_p7), %s1436_s8, 7 }
  0x66   : > { %s211_s5 = scalar_lea.sflag (!%p1631_p7), [#allocation3], %s1436_s8  ;;  %s1442_s9 = scalar_lea.vmem (!%p1631_p7), [#allocation2], %s714_s7 }
  0x6c   : > { %1191 = dma.done.wait (%p1632_p12), %s211_s5, 2048  }
  0x6d   : > { %1193 = vsyncadd (%p1632_p12), %s211_s5, 4294965248  ;;  %p1633_p3 = scmp.ne.s32.totalorder %s1622_s21, 0 }
  0x6f   : > { %1195 = dma.done.wait (%p1633_p3), [#allocation6], 32  }
  0x70   : > { %1197 = vsyncadd (%p1633_p3), [#allocation6], 4294967264  ;;  %v792_v0 = vld [vmem:[%s1442_s9] sm:$0xff]   ;;  %v935_v4 = vld [vmem:[%s1442_s9 + $0x8] sm:$0xff]   ;;  %s1482_s21 = scalar_lea.vmem [#allocation8], %s714_s7  ;;  %s790_s23 = sshll.u32 %s1216_s15, 11 }
  0x71   : > { %v1453_v1 = vld [vmem:[#allocation5] ss:$0 sm:$0xff]  ;;  %v793_v2 = vunpack.c.l.bf16 %v792_v0  ;;  %v794_v3 = vunpack.c.h.bf16 %v792_v0  ;;  %v936_v5 = vld [vmem:[%s1442_s9 + $0x10] sm:$0xff]   ;;  %v937_v6 = vld [vmem:[%s1442_s9 + $0x18] sm:$0xff]   ;;  %v797_v8 = vunpack.c.l.bf16 %v935_v4  ;;  %v798_v9 = vunpack.c.h.bf16 %v935_v4  ;;  %s596_s26 = sshll.u32 %s1482_s21, 4  ;;  %s1560_s18 = scalar_lea.hbm %s1615_s3, %s790_s23  ;;  %s1562_s26 = int_to_ptr.vmem [resolvable:$true] %s596_s26 }
  0x72   : > { %v1458_v7 = vld [vmem:[#allocation7] ss:$0 sm:$0xff]  ;;  %v801_v10 = vunpack.c.l.bf16 %v936_v5  ;;  %v802_v11 = vunpack.c.h.bf16 %v936_v5  ;;  %v805_v14 = vunpack.c.l.bf16 %v937_v6  ;;  %v806_v15 = vunpack.c.h.bf16 %v937_v6  ;;  %v939_v33 = vld [vmem:[%s1442_s9 + $0x28] sm:$0xff]   ;;  %v940_v38 = vld [vmem:[%s1442_s9 + $0x30] sm:$0xff]   ;;  %s582_s19 = scalar_lea.sflag [#allocation4], %s1436_s8  ;;  %s1138_s20 = scalar_lea.vmem %s1562_s26, 2048 }
  0x73   : > { %v318_v12 = vmul.f32 %v793_v2, %v1453_v1  ;;  %v319_v13 = vmul.f32 %v794_v3, %v1453_v1  ;;  %v320_v16 = vmul.f32 %v797_v8, %v1453_v1  ;;  %v321_v17 = vmul.f32 %v798_v9, %v1453_v1  ;;  %v938_v28 = vld [vmem:[%s1442_s9 + $0x20] sm:$0xff]   ;;  %v941_v43 = vld [vmem:[%s1442_s9 + $0x38] sm:$0xff]   ;;  %p1139_p5 = scmp.ne.s32.totalorder %s1562_s26, %s1138_s20  ;;  %p1634_p10 = scmp.ne.s32.totalorder %s1625_s24, 0 }
  0x74   : > { %v322_v18 = vmul.f32 %v801_v10, %v1453_v1  ;;  %v323_v19 = vmul.f32 %v802_v11, %v1453_v1  ;;  %v324_v22 = vmul.f32 %v805_v14, %v1453_v1  ;;  %v325_v23 = vmul.f32 %v806_v15, %v1453_v1  ;;  %v942_v0 = vld [vmem:[%s1442_s9 + $0x40] sm:$0xff]   ;;  %v943_v11 = vld [vmem:[%s1442_s9 + $0x48] sm:$0xff]   ;;  %s1231_s15 = smov [#allocation8]  }
  0x75   : > { %v357_v20 = vadd.f32 %v1458_v7, %v318_v12  ;;  %v358_v21 = vadd.f32 %v1458_v7, %v319_v13  ;;  %v359_v24 = vadd.f32 %v1458_v7, %v320_v16  ;;  %v360_v25 = vadd.f32 %v1458_v7, %v321_v17  ;;  %v944_v16 = vld [vmem:[%s1442_s9 + $0x50] sm:$0xff]   ;;  %p1140_p11 = pnand %p1139_p5, %p1634_p10  ;;  %s1142_s6 = sshll.u32 %s1231_s15, 4  ;;  %s1143_s6 = int_to_ptr.vmem [resolvable:$false] %s1142_s6 }
  0x76   : > { %v361_v26 = vadd.f32 %v1458_v7, %v322_v18  ;;  %v362_v27 = vadd.f32 %v1458_v7, %v323_v19  ;;  %v363_v31 = vadd.f32 %v1458_v7, %v324_v22  ;;  %v364_v32 = vadd.f32 %v1458_v7, %v325_v23  ;;  %s1144_s11 = scalar_lea.vmem %s1143_s6, 4096  ;;  %p1145_p0 = scmp.lt.s32.totalorder %s1562_s26, %s1143_s6 }
  0x77   : > { %v389_v29 = vmax.f32 %v357_v20, 0.0  ;;  %v390_v30 = vmax.f32 %v358_v21, 0.0  ;;  %v391_v34 = vmax.f32 %v359_v24, 0.0  ;;  %v392_v35 = vmax.f32 %v360_v25, 0.0  ;;  %v945_v25 = vld [vmem:[%s1442_s9 + $0x58] sm:$0xff]   ;;  %p1141_p1 = pneg %p1140_p11  ;;  %p1146_p6 = scmp.lt.s32.totalorder %s1144_s11, %s1138_s20 }
  0x78   : > { %v393_v36 = vmax.f32 %v361_v26, 0.0  ;;  %v394_v37 = vmax.f32 %v362_v27, 0.0  ;;  %v395_v40 = vmax.f32 %v363_v31, 0.0  ;;  %v396_v41 = vmax.f32 %v364_v32, 0.0 }
  0x79   : > { %v858_v39 = vpack.c.bf16 %v390_v30, %v389_v29  ;;  %v809_v42 = vunpack.c.l.bf16 %v938_v28  ;;  %v863_v44 = vpack.c.bf16 %v392_v35, %v391_v34  ;;  %v810_v46 = vunpack.c.h.bf16 %v938_v28  ;;  %p1147_p2 = por %p1146_p6, %p1145_p0 }
  0x7a   : > { %v868_v45 = vpack.c.bf16 %v394_v37, %v393_v36  ;;  %v813_v47 = vunpack.c.l.bf16 %v939_v33  ;;  %v873_v48 = vpack.c.bf16 %v396_v41, %v395_v40  ;;  %v814_v50 = vunpack.c.h.bf16 %v939_v33 }
  0x7b   : > { %859 = vst [vmem:[%s1482_s21] sm:$0xff] %v858_v39   ;;  %v326_v49 = vmul.f32 %v809_v42, %v1453_v1  ;;  %v817_v51 = vunpack.c.l.bf16 %v940_v38  ;;  %950 = vst [vmem:[%s1482_s21 + $0x8] sm:$0xff] %v863_v44   ;;  %v327_v52 = vmul.f32 %v810_v46, %v1453_v1  ;;  %v818_v54 = vunpack.c.h.bf16 %v940_v38  ;;  %v946_v38 = vld [vmem:[%s1442_s9 + $0x60] sm:$0xff]   ;;  %p1148_p9 = pnand %p1147_p2, %p1141_p1 }
  0x7c   : > { %951 = vst [vmem:[%s1482_s21 + $0x10] sm:$0xff] %v868_v45   ;;  %v328_v53 = vmul.f32 %v813_v47, %v1453_v1  ;;  %v821_v55 = vunpack.c.l.bf16 %v941_v43  ;;  %952 = vst [vmem:[%s1482_s21 + $0x18] sm:$0xff] %v873_v48   ;;  %v329_v57 = vmul.f32 %v814_v50, %v1453_v1  ;;  %v822_v59 = vunpack.c.h.bf16 %v941_v43 }
  0x7d   : > { %v365_v56 = vadd.f32 %v1458_v7, %v326_v49  ;;  %v330_v58 = vmul.f32 %v817_v51, %v1453_v1  ;;  %v366_v60 = vadd.f32 %v1458_v7, %v327_v52  ;;  %v331_v62 = vmul.f32 %v818_v54, %v1453_v1  ;;  %v947_v51 = vld [vmem:[%s1442_s9 + $0x68] sm:$0xff]  }
  0x7e   : > { %v367_v61 = vadd.f32 %v1458_v7, %v328_v53  ;;  %v332_v63 = vmul.f32 %v821_v55, %v1453_v1  ;;  %v368_v3 = vadd.f32 %v1458_v7, %v329_v57  ;;  %v333_v5 = vmul.f32 %v822_v59, %v1453_v1 }
  0x7f   : > { %v397_v2 = vmax.f32 %v365_v56, 0.0  ;;  %v369_v4 = vadd.f32 %v1458_v7, %v330_v58  ;;  %v398_v6 = vmax.f32 %v366_v60, 0.0  ;;  %v370_v9 = vadd.f32 %v1458_v7, %v331_v62  ;;  %v948_v60 = vld [vmem:[%s1442_s9 + $0x70] sm:$0xff]  }
  0x80   : > { %v399_v8 = vmax.f32 %v367_v61, 0.0  ;;  %v371_v10 = vadd.f32 %v1458_v7, %v332_v63  ;;  %v400_v12 = vmax.f32 %v368_v3, 0.0  ;;  %v372_v14 = vadd.f32 %v1458_v7, %v333_v5 }
  0x81   : > { %v401_v13 = vmax.f32 %v369_v4, 0.0  ;;  %v825_v15 = vunpack.c.l.bf16 %v942_v0  ;;  %v878_v17 = vpack.c.bf16 %v398_v6, %v397_v2  ;;  %v402_v18 = vmax.f32 %v370_v9, 0.0  ;;  %v949_v2 = vld [vmem:[%s1442_s9 + $0x78] sm:$0xff]  }
  0x82   : > { %v403_v19 = vmax.f32 %v371_v10, 0.0  ;;  %v826_v20 = vunpack.c.h.bf16 %v942_v0  ;;  %v883_v21 = vpack.c.bf16 %v400_v12, %v399_v8  ;;  %v404_v22 = vmax.f32 %v372_v14, 0.0 }
  0x83   : > { %v334_v23 = vmul.f32 %v825_v15, %v1453_v1  ;;  %v829_v24 = vunpack.c.l.bf16 %v943_v11  ;;  %953 = vst [vmem:[%s1482_s21 + $0x20] sm:$0xff] %v878_v17   ;;  %v888_v26 = vpack.c.bf16 %v402_v18, %v401_v13  ;;  %v830_v28 = vunpack.c.h.bf16 %v943_v11 }
  0x84   : > { %v335_v27 = vmul.f32 %v826_v20, %v1453_v1  ;;  %v833_v29 = vunpack.c.l.bf16 %v944_v16  ;;  %954 = vst [vmem:[%s1482_s21 + $0x28] sm:$0xff] %v883_v21   ;;  %v893_v30 = vpack.c.bf16 %v404_v22, %v403_v19  ;;  %v834_v33 = vunpack.c.h.bf16 %v944_v16 }
  0x85   : > { %v373_v31 = vadd.f32 %v1458_v7, %v334_v23  ;;  %v336_v32 = vmul.f32 %v829_v24, %v1453_v1  ;;  %955 = vst [vmem:[%s1482_s21 + $0x30] sm:$0xff] %v888_v26   ;;  %v337_v35 = vmul.f32 %v830_v28, %v1453_v1  ;;  %v837_v37 = vunpack.c.l.bf16 %v945_v25 }
  0x86   : > { %v374_v34 = vadd.f32 %v1458_v7, %v335_v27  ;;  %v338_v36 = vmul.f32 %v833_v29, %v1453_v1  ;;  %956 = vst [vmem:[%s1482_s21 + $0x38] sm:$0xff] %v893_v30   ;;  %v339_v41 = vmul.f32 %v834_v33, %v1453_v1  ;;  %v838_v42 = vunpack.c.h.bf16 %v945_v25 }
  0x87   : > { %v405_v39 = vmax.f32 %v373_v31, 0.0  ;;  %v375_v40 = vadd.f32 %v1458_v7, %v336_v32  ;;  %v376_v44 = vadd.f32 %v1458_v7, %v337_v35  ;;  %v340_v46 = vmul.f32 %v837_v37, %v1453_v1 }
  0x88   : > { %v406_v43 = vmax.f32 %v374_v34, 0.0  ;;  %v377_v45 = vadd.f32 %v1458_v7, %v338_v36  ;;  %v378_v48 = vadd.f32 %v1458_v7, %v339_v41  ;;  %v341_v49 = vmul.f32 %v838_v42, %v1453_v1 }
  0x89   : > { %v407_v47 = vmax.f32 %v375_v40, 0.0  ;;  %v841_v50 = vunpack.c.l.bf16 %v946_v38  ;;  %v408_v53 = vmax.f32 %v376_v44, 0.0  ;;  %v379_v55 = vadd.f32 %v1458_v7, %v340_v46 }
  0x8a   : > { %v898_v52 = vpack.c.bf16 %v406_v43, %v405_v39  ;;  %v409_v54 = vmax.f32 %v377_v45, 0.0  ;;  %v410_v56 = vmax.f32 %v378_v48, 0.0  ;;  %v380_v57 = vadd.f32 %v1458_v7, %v341_v49 }
  0x8b   : > { %v842_v58 = vunpack.c.h.bf16 %v946_v38  ;;  %v342_v59 = vmul.f32 %v841_v50, %v1453_v1  ;;  %v903_v61 = vpack.c.bf16 %v408_v53, %v407_v47  ;;  %v411_v62 = vmax.f32 %v379_v55, 0.0 }
  0x8c   : > { %957 = vst [vmem:[%s1482_s21 + $0x40] sm:$0xff] %v898_v52   ;;  %v845_v63 = vunpack.c.l.bf16 %v947_v51  ;;  %v846_v0 = vunpack.c.h.bf16 %v947_v51  ;;  %v908_v3 = vpack.c.bf16 %v410_v56, %v409_v54  ;;  %v412_v4 = vmax.f32 %v380_v57, 0.0 }
  0x8d   : > { %v343_v5 = vmul.f32 %v842_v58, %v1453_v1  ;;  %v381_v6 = vadd.f32 %v1458_v7, %v342_v59  ;;  %958 = vst [vmem:[%s1482_s21 + $0x48] sm:$0xff] %v903_v61   ;;  %v849_v10 = vunpack.c.l.bf16 %v948_v60  ;;  %v850_v11 = vunpack.c.h.bf16 %v948_v60 }
  0x8e   : > { %v344_v8 = vmul.f32 %v845_v63, %v1453_v1  ;;  %v345_v9 = vmul.f32 %v846_v0, %v1453_v1  ;;  %959 = vst [vmem:[%s1482_s21 + $0x50] sm:$0xff] %v908_v3   ;;  %v913_v12 = vpack.c.bf16 %v412_v4, %v411_v62  ;;  %v853_v15 = vunpack.c.l.bf16 %v949_v2 }
  0x8f   : > { %v382_v13 = vadd.f32 %v1458_v7, %v343_v5  ;;  %v413_v14 = vmax.f32 %v381_v6, 0.0  ;;  %v346_v18 = vmul.f32 %v849_v10, %v1453_v1  ;;  %v347_v19 = vmul.f32 %v850_v11, %v1453_v1 }
  0x90   : > { %v383_v16 = vadd.f32 %v1458_v7, %v344_v8  ;;  %v384_v17 = vadd.f32 %v1458_v7, %v345_v9  ;;  %960 = vst [vmem:[%s1482_s21 + $0x58] sm:$0xff] %v913_v12   ;;  %v854_v21 = vunpack.c.h.bf16 %v949_v2  ;;  %v348_v22 = vmul.f32 %v853_v15, %v1453_v1 }
  0x91   : > { %v414_v20 = vmax.f32 %v382_v13, 0.0  ;;  %v385_v25 = vadd.f32 %v1458_v7, %v346_v18  ;;  %v386_v26 = vadd.f32 %v1458_v7, %v347_v19 }
  0x92   : > { %v415_v23 = vmax.f32 %v383_v16, 0.0  ;;  %v416_v24 = vmax.f32 %v384_v17, 0.0  ;;  %v349_v28 = vmul.f32 %v854_v21, %v1453_v1  ;;  %v387_v29 = vadd.f32 %v1458_v7, %v348_v22 }
  0x93   : > { %v918_v27 = vpack.c.bf16 %v414_v20, %v413_v14  ;;  %v417_v31 = vmax.f32 %v385_v25, 0.0  ;;  %v418_v32 = vmax.f32 %v386_v26, 0.0 }
  0x94   : > { %v923_v30 = vpack.c.bf16 %v416_v24, %v415_v23  ;;  %v388_v33 = vadd.f32 %v1458_v7, %v349_v28  ;;  %v419_v34 = vmax.f32 %v387_v29, 0.0 }
  0x95   : > { %961 = vst [vmem:[%s1482_s21 + $0x60] sm:$0xff] %v918_v27   ;;  %v928_v35 = vpack.c.bf16 %v418_v32, %v417_v31 }
  0x96   : > { %962 = vst [vmem:[%s1482_s21 + $0x68] sm:$0xff] %v923_v30   ;;  %v420_v36 = vmax.f32 %v388_v33, 0.0 }
  0x97   : > { %963 = vst [vmem:[%s1482_s21 + $0x70] sm:$0xff] %v928_v35  }
  0x98   : > { %v933_v1 = vpack.c.bf16 %v420_v36, %v419_v34 }
  0x9a   : > { %964 = vst [vmem:[%s1482_s21 + $0x78] sm:$0xff] %v933_v1  }
  0x9b   : > { %1151 = shalt.err (!%p1148_p9)
}
  0x9c   : > { %s1152_s4 = scalar_lea.hbm %s1560_s18, 2048  ;;  %s1156_s7 = scalar_lea.hbm %s1615_s3, 4096 }
  0x9d   : > { %p1153_p8 = scmp.ne.s32.totalorder %s1560_s18, %s1152_s4  ;;  %p1157_p7 = scmp.lt.u32.totalorder %s1560_s18, %s1615_s3 }
  0x9e   : > { %p1158_p12 = scmp.lt.u32.totalorder %s1156_s7, %s1152_s4  ;;  %p1160_p5 = scmp.lt.u32.totalorder %s1152_s4, %s1560_s18 }
  0x9f   : > { %p1154_p13 = pnand %p1153_p8, %p1634_p10 }
  0xa0   : > { %p1159_p3 = por %p1158_p12, %p1157_p7 }
  0xa1   : > { %p1155_p4 = pneg %p1154_p13 }
  0xa2   : > { %p1161_p11 = por %p1160_p5, %p1159_p3 }
  0xa4   : > { %p1162_p1 = pnand %p1161_p11, %p1155_p4 }
  0xa6   : > { %1165 = shalt.err (!%p1162_p1)
}
  0xa7   : > { %s1232_s21 = smov 64   ;;  %s1233_s23 = smov 4  }
  0xa8   : > { %975 = dma.vmem_to_hbm [thread:$0]  (%p1634_p10), %s1562_s26, 2048, %s1560_s18, %s582_s19, %s1232_s21, %s1232_s21, %s1233_s23  }
  0xa9 PF: > { %s611_s29 = sand.u32 1, %s1204_s12   ;;  %p1635_p0 = scmp.ne.s32.totalorder %s1626_s25, 0 }
  0xaa   : > { %p1636_p6 = scmp.ge.s32.totalorder %s1224_s17, 2  ;;  %s612_s10 = scalar_lea.sflag [#allocation4], %s611_s29 }
  0xac   : > { %p989_p2 = pnand %p1636_p6, %p1635_p0 }
  0xae   : > { %1199 = dma.done.wait (!%p989_p2), %s612_s10, 2048  }
  0xaf   : > { %1201 = vsyncadd (!%p989_p2), %s612_s10, 4294965248  ;;  %s20_s17 = sadd.s32 1, %s1224_s17   ;;  %s1637_s12 = smov %s1208_s13 }
  0xb0   : > { %p17_p9 = scmp.ge.s32.totalorder %s20_s17, 4   ;;  %s1638_s13 = smov %s1212_s14 }
  0xb1   : > { %s1639_s14 = smov %s1403_s28  ;;  %s1640_s15 = smov %s1220_s16 }
  0xb2   : > { %s1641_s16 = smov %s1643_s30  ;;  %19 = sbr.rel (!%p17_p9) target bundleno = 7 (0x7), region = 87 }
  0xb9   :  { %617 = vsyncpa [#allocation3], 1 }
  0xba   :  { %619 = vsyncpa [#allocation3 + $0x1], 1 }
  0xbb   :  { %620 = vsyncpa [#allocation6], 1 }
  0xbc   :  { %621 = vsyncpa [#allocation4], 1 }
  0xbd   :  { %623 = vsyncpa [#allocation4 + $0x1], 1 }

// kernel: conv_bn_relu.2
= control target key start
LH: loop header
LB: loop body
LE: loop exit
PB: predicated region body
PF: predicated region fallthrough
CT: control target
= control target key end

     0   :  { %9 = vsyncpa [#allocation4], 0  ;;  %s2211_s0 = inlined_call_operand.hbm [shape: bf16[512,128], index: 0, kind: input, shape index: {}]   ;;  %s2212_s1 = inlined_call_operand.hbm [shape: bf16[128,128], index: 1, kind: input, shape index: {}]   ;;  %s2213_s2 = inlined_call_operand.hbm [shape: bf16[512,128], index: 2, kind: output, shape index: {0}]   ;;  %s2214_s3 = inlined_call_operand.hbm [shape: f32[2,8,128], index: 3, kind: output, shape index: {1}]  }
   0x1   :  { %11 = vsyncpa [#allocation4 + $0x1], 0 }
   0x2   :  { %12 = vsyncpa [#allocation7], 0 }
   0x3   :  { %13 = vsyncpa [#allocation5], 0 }
   0x4   :  { %15 = vsyncpa [#allocation5 + $0x1], 0 }
   0x5   :  { %16 = vsyncpa [#allocation10], 0 }
   0x6   :  { %18 = vsyncpa [#allocation10 + $0x1], 0  ;;  %s1818_s12 = smov 0   ;;  %s1820_s13 = smov 0  }
   0x7   :  { %s1822_s14 = smov 0   ;;  %s1824_s15 = smov 0  }
   0x8   :  { %s1826_s16 = smov 0   ;;  %s1828_s17 = smov 0  }
   0x9 LB: > { %s1213_s18 = sadd.s32 4294967295, %s1788_s17   ;;  %s1214_s19 = sadd.s32 4294967294, %s1788_s17   ;;  %s1788_s17 = sphi %s1828_s17, %s24_s17   ;;  %s1784_s16 = sphi %s1826_s16, %s2238_s16   ;;  %s1780_s15 = sphi %s1824_s15, %s2237_s15   ;;  %s1776_s14 = sphi %s1822_s14, %s2236_s14   ;;  %s1772_s13 = sphi %s1820_s13, %s2235_s13   ;;  %s1768_s12 = sphi %s1818_s12, %s2234_s12  }
   0xa   : > { %p65_p0 = scmp.ne.s32.totalorder %s1772_s13, %s1768_s12  ;;  %p1852_p1 = scmp.eq.s32.totalorder %s1213_s18, 0 }
   0xb   : > { %p1856_p2 = scmp.eq.s32.totalorder %s1213_s18, 1  ;;  %p125_p3 = scmp.eq.s32.totalorder %s1214_s19, 1 }
   0xc   : > { %s2219_s20 = scalar_select %p1852_p1, 1, 0 }
   0xd   : > { %s2220_s21 = scalar_select %p1856_p2, 1, 0 }
   0xe   : > { %p1862_p4 = por %p1852_p1, %p65_p0  ;;  %p1215_p5 = scmp.ge.s32.totalorder %s1788_s17, 1 }
   0xf   : > { %p1867_p6 = por %p125_p3, %p65_p0  ;;  %p160_p7 = scmp.lt.s32.totalorder %s1788_s17, 3 }
  0x10   : > { %s2221_s22 = scalar_select %p1862_p4, 1, 0 }
  0x11   : > { %s2222_s23 = scalar_select %p1867_p6, 1, 0 }
  0x12   : > { %p1872_p8 = pnand %p1215_p5, %p160_p7  ;;  %s1790_s25 = smov [#allocation6]  }
  0x13   : > { %s176_s26 = sshll.u32 %s1790_s25, 4  ;;  %s43_s28 = sadd.s32 1, %s1784_s16  ;;  %s177_s26 = int_to_ptr.vmem [resolvable:$true] %s176_s26 }
  0x14   : > { %s2223_s24 = scalar_select %p1872_p8, 1, 0 }
  0x15   : > { %p1516_p9 = pneg %p1872_p8  ;;  %s1612_s4 = scalar_lea.hbm %s2212_s1, 1024 }
  0x16   : > { %p1613_p12 = scmp.ne.s32.totalorder %s2212_s1, %s1612_s4  ;;  %p1619_p5 = scmp.lt.u32.totalorder %s1612_s4, %s2212_s1 }
  0x17   : > { %p1881_p11 = pnand %p1516_p9, %p1852_p1 }
  0x19   : > { %p1614_p13 = pneg %p1881_p11 }
  0x1b   : > { %p1615_p0 = pnand %p1614_p13, %p1613_p12 }
  0x1d   : > { %p1616_p3 = pneg %p1615_p0 }
  0x1f   : > { %p1621_p7 = pnand %p1619_p5, %p1616_p3 }
  0x21   : > { %1624 = shalt.err (!%p1621_p7)
}
  0x22   : > { %s1625_s9 = scalar_lea.vmem %s177_s26, 1024  ;;  %p1633_p1 = scmp.lt.s32.totalorder %s177_s26, %s177_s26 }
  0x23   : > { %p1626_p9 = scmp.ne.s32.totalorder %s177_s26, %s1625_s9  ;;  %p1634_p4 = scmp.lt.s32.totalorder %s1625_s9, %s1625_s9 }
  0x25   : > { %p1628_p10 = pnand %p1626_p9, %p1614_p13  ;;  %p1635_p8 = por %p1634_p4, %p1633_p1 }
  0x27   : > { %p1629_p6 = pneg %p1628_p10 }
  0x29   : > { %p1636_p2 = pnand %p1635_p8, %p1629_p6 }
  0x2b   : > { %1639 = shalt.err (!%p1636_p2)
}
  0x2c   : > { %s1791_s10 = smov 64   ;;  %s1792_s11 = smov 4  }
  0x2d   : > { %1519 = dma.hbm_to_vmem [thread:$0]  (!%p1881_p11), %s2212_s1, 1024, %s177_s26, [#allocation7], %s1791_s10, %s1791_s10, %s1792_s11  }
  0x2e   : > { %p45_p1 = scmp.ge.s32.totalorder %s43_s28, 2  ;;  %s52_s25 = sadd.s32 1, %s1776_s14 }
  0x2f   : > { %p59_p2 = scmp.ne.s32.totalorder %s1776_s14, %s1772_s13  ;;  %p60_p4 = scmp.eq.s32.totalorder %s1788_s17, 0 }
  0x30   : > { %s2240_s28 = smov (%p45_p1, %s43_s28), 0  ;;  %p2226_p8 = scmp.ne.s32.totalorder %s2220_s21, 0 }
  0x31   : > { %p1911_p6 = por %p60_p4, %p59_p2  ;;  %s47_s30 = ssub.s32 %s1784_s16, %s2240_s28 }
  0x32   : > { %p1917_p10 = por %p2226_p8, %p59_p2  ;;  %p1532_p12 = scmp.lt.s32.totalorder %s1788_s17, 2 }
  0x33   : > { %p50_p11 = scmp.eq.s32.totalorder %s47_s30, 0  ;;  %s190_s26 = sand.u32 1, %s1776_s14  }
  0x34   : > { %s1218_s4 = sshll.u32 %s190_s26, 7  ;;  %s1289_s6 = sshll.u32 %s1784_s16, 11 }
  0x35   : > { %s1926_s5 = scalar_select %p50_p11, %s1776_s14, %s52_s25  }
  0x36   : > { %s1932_s9 = scalar_lea.hbm %s2211_s0, %s1289_s6  ;;  %s194_s21 = scalar_lea.vmem [#allocation3], %s1218_s4 }
  0x37   : > { %s202_s18 = sshll.u32 %s194_s21, 4  ;;  %p1938_p13 = pnand %p1532_p12, %p1911_p6  ;;  %s1934_s18 = int_to_ptr.vmem [resolvable:$true] %s202_s18 }
  0x38   : > { %s1942_s25 = scalar_lea.sflag [#allocation4], %s190_s26  ;;  %s1640_s30 = scalar_lea.hbm %s1932_s9, 2048 }
  0x39   : > { %p1641_p0 = scmp.ne.s32.totalorder %s1932_s9, %s1640_s30  ;;  %p1642_p3 = pneg %p1938_p13 }
  0x3a   : > { %s1645_s29 = scalar_lea.hbm %s2211_s0, 4096  ;;  %p1646_p9 = scmp.lt.u32.totalorder %s1932_s9, %s2211_s0 }
  0x3b   : > { %p1643_p5 = pnand %p1642_p3, %p1641_p0  ;;  %p1647_p1 = scmp.lt.u32.totalorder %s1645_s29, %s1640_s30 }
  0x3c   : > { %p1649_p4 = scmp.lt.u32.totalorder %s1640_s30, %s1932_s9 }
  0x3d   : > { %p1644_p7 = pneg %p1643_p5  ;;  %p1648_p2 = por %p1647_p1, %p1646_p9 }
  0x3f   : > { %p1650_p6 = por %p1649_p4, %p1648_p2 }
  0x41   : > { %p1651_p8 = pnand %p1650_p6, %p1644_p7 }
  0x43   : > { %1654 = shalt.err (!%p1651_p8)
}
  0x44   : > { %s1655_s26 = scalar_lea.vmem %s1934_s18, 2048  ;;  %s1793_s21 = smov [#allocation3]  }
  0x45   : > { %p1656_p12 = scmp.ne.s32.totalorder %s1934_s18, %s1655_s26  ;;  %s1660_s4 = sshll.u32 %s1793_s21, 4  ;;  %s1661_s4 = int_to_ptr.vmem [resolvable:$false] %s1660_s4 }
  0x46   : > { %s1662_s6 = scalar_lea.vmem %s1661_s4, 4096  ;;  %p1663_p5 = scmp.lt.s32.totalorder %s1934_s18, %s1661_s4 }
  0x47   : > { %p1658_p11 = pnand %p1656_p12, %p1642_p3  ;;  %p1664_p9 = scmp.lt.s32.totalorder %s1662_s6, %s1655_s26 }
  0x49   : > { %p1659_p0 = pneg %p1658_p11  ;;  %p1665_p1 = por %p1664_p9, %p1663_p5 }
  0x4b   : > { %p1666_p2 = pnand %p1665_p1, %p1659_p0 }
  0x4d   : > { %1669 = shalt.err (!%p1666_p2)
}
  0x4e   : > { %1523 = dma.hbm_to_vmem [thread:$0]  (!%p1938_p13), %s1932_s9, 2048, %s1934_s18, %s1942_s25, %s1791_s10, %s1791_s10, %s1792_s11  }
  0x4f   : > { %p2229_p3 = scmp.ne.s32.totalorder %s2223_s24, 0 }
  0x50   : > { %s1976_s30 = sand.u32 (!%p2229_p3), 1, %s1772_s13   ;;  %p2230_p7 = scmp.ne.s32.totalorder (!%p2229_p3), %s2221_s22, 0 }
  0x51   : > { %214 = sbr.rel (%p2229_p3) target bundleno = 441 (0x1b9), region = 28  ;;  %s1222_s29 = sshll.u32 (!%p2229_p3), %s1976_s30, 7 }
  0x52   : > { %s217_s7 = scalar_lea.sflag (!%p2229_p3), [#allocation4], %s1976_s30  ;;  %s1982_s19 = scalar_lea.vmem (!%p2229_p3), [#allocation3], %s1222_s29 }
  0x58   : > { %1751 = dma.done.wait (%p2230_p7), %s217_s7, 2048  }
  0x59   : > { %1753 = vsyncadd (%p2230_p7), %s217_s7, 4294965248  ;;  %p2231_p13 = scmp.ne.s32.totalorder %s2219_s20, 0 }
  0x5b   : > { %1755 = dma.done.wait (%p2231_p13), [#allocation7], 1024  }
  0x5c   : > { %1757 = vsyncadd (%p2231_p13), [#allocation7], 4294966272  ;;  %v1588_v0 = vld [vmem:[#allocation6] sm:$0xff]   ;;  %v1589_v1 = vld [vmem:[#allocation6 + $0x8] sm:$0xff]   ;;  %s2022_s20 = scalar_lea.vmem [#allocation8], %s1222_s29  ;;  %s1322_s22 = sshll.u32 %s1780_s15, 11 }
  0x5d   : > { %1442 = vmatprep.subr.bf16.mxu0 %v1588_v0  ;;  %1490 = vmatprep.subr.bf16.mxu1 %v1588_v0  ;;  %v1590_v2 = vld [vmem:[#allocation6 + $0x10] sm:$0xff]   ;;  %v1591_v3 = vld [vmem:[#allocation6 + $0x18] sm:$0xff]   ;;  %v1596_v4 = vld [vmem:[%s1982_s19] sm:$0xff]   ;;  %s1064_s24 = sshll.u32 %s2022_s20, 4  ;;  %s2075_s9 = scalar_lea.hbm %s2213_s2, %s1322_s22  ;;  %s2077_s24 = int_to_ptr.vmem [resolvable:$true] %s1064_s24 }
  0x5e   : > { %1443 = vmatpush3.bf16.msra.mxu0 %v1588_v0  ;;  %1498 = vmatpush3.bf16.msra.mxu1 %v1588_v0  ;;  %v1592_v5 = vld [vmem:[#allocation6 + $0x20] sm:$0xff]   ;;  %v1593_v6 = vld [vmem:[#allocation6 + $0x28] sm:$0xff]   ;;  %v1594_v8 = vld [vmem:[#allocation6 + $0x30] sm:$0xff]   ;;  %s1045_s18 = scalar_lea.sflag [#allocation5], %s1976_s30  ;;  %s1670_s25 = scalar_lea.vmem %s2077_s24, 2048 }
  0x5f   : > { %1444 = vmatprep.subr.bf16.mxu0 %v1589_v1  ;;  %1491 = vmatprep.subr.bf16.mxu1 %v1589_v1  ;;  %v1604_v7 = vld [vmem:[%s1982_s19 + $0x40] sm:$0xff]   ;;  %v1595_v9 = vld [vmem:[#allocation6 + $0x38] sm:$0xff]   ;;  %v1597_v10 = vld [vmem:[%s1982_s19 + $0x8] sm:$0xff]   ;;  %p1671_p4 = scmp.ne.s32.totalorder %s2077_s24, %s1670_s25  ;;  %s1794_s8 = smov [#allocation8]  }
  0x60   : > { %1458 = vmatprep.mubr.bf16.mxu0 %v1596_v4  ;;  %1474 = vmatprep.mubr.bf16.mxu1 %v1604_v7  ;;  %v1605_v11 = vld [vmem:[%s1982_s19 + $0x48] sm:$0xff]   ;;  %v1598_v12 = vld [vmem:[%s1982_s19 + $0x10] sm:$0xff]   ;;  %v1599_v14 = vld [vmem:[%s1982_s19 + $0x18] sm:$0xff]   ;;  %s1674_s26 = sshll.u32 %s1794_s8, 4  ;;  %s1675_s26 = int_to_ptr.vmem [resolvable:$false] %s1674_s26 }
  0x61   : > { %v1606_v13 = vld [vmem:[%s1982_s19 + $0x50] sm:$0xff]   ;;  %v1607_v15 = vld [vmem:[%s1982_s19 + $0x58] sm:$0xff]   ;;  %v1600_v16 = vld [vmem:[%s1982_s19 + $0x20] sm:$0xff]   ;;  %p1672_p6 = pnand %p1671_p4, %p1917_p10  ;;  %s1676_s21 = scalar_lea.vmem %s1675_s26, 4096 }
  0x62   : > { %1445 = vmatpush3.bf16.msra.mxu0 %v1589_v1  ;;  %1499 = vmatpush3.bf16.msra.mxu1 %v1589_v1  ;;  %v1608_v17 = vld [vmem:[%s1982_s19 + $0x60] sm:$0xff]   ;;  %v1601_v18 = vld [vmem:[%s1982_s19 + $0x28] sm:$0xff]   ;;  %v1602_v20 = vld [vmem:[%s1982_s19 + $0x30] sm:$0xff]   ;;  %p1677_p12 = scmp.lt.s32.totalorder %s2077_s24, %s1675_s26  ;;  %p1678_p11 = scmp.lt.s32.totalorder %s1676_s21, %s1670_s25 }
  0x63   : > { %1446 = vmatprep.subr.bf16.mxu0 %v1590_v2  ;;  %1492 = vmatprep.subr.bf16.mxu1 %v1590_v2  ;;  %v1609_v19 = vld [vmem:[%s1982_s19 + $0x68] sm:$0xff]   ;;  %v1610_v21 = vld [vmem:[%s1982_s19 + $0x70] sm:$0xff]   ;;  %v1603_v22 = vld [vmem:[%s1982_s19 + $0x38] sm:$0xff]   ;;  %p1673_p8 = pneg %p1672_p6 }
  0x64   : > { %v1611_v23 = vld [vmem:[%s1982_s19 + $0x78] sm:$0xff]   ;;  %p1679_p0 = por %p1678_p11, %p1677_p12 }
  0x66   : > { %1447 = vmatpush3.bf16.msra.mxu0 %v1590_v2  ;;  %1500 = vmatpush3.bf16.msra.mxu1 %v1590_v2  ;;  %p1680_p5 = pnand %p1679_p0, %p1673_p8 }
  0x67   : > { %1448 = vmatprep.subr.bf16.mxu0 %v1591_v3  ;;  %1493 = vmatprep.subr.bf16.mxu1 %v1591_v3 }
  0x6a   : > { %1449 = vmatpush3.bf16.msra.mxu0 %v1591_v3  ;;  %1501 = vmatpush3.bf16.msra.mxu1 %v1591_v3 }
  0x6b   : > { %1450 = vmatprep.subr.bf16.mxu0 %v1592_v5  ;;  %1494 = vmatprep.subr.bf16.mxu1 %v1592_v5 }
  0x6e   : > { %1451 = vmatpush3.bf16.msra.mxu0 %v1592_v5  ;;  %1502 = vmatpush3.bf16.msra.mxu1 %v1592_v5 }
  0x6f   : > { %1452 = vmatprep.subr.bf16.mxu0 %v1593_v6  ;;  %1495 = vmatprep.subr.bf16.mxu1 %v1593_v6 }
  0x72   : > { %1453 = vmatpush3.bf16.msra.mxu0 %v1593_v6  ;;  %1503 = vmatpush3.bf16.msra.mxu1 %v1593_v6 }
  0x73   : > { %1454 = vmatprep.subr.bf16.mxu0 %v1594_v8  ;;  %1496 = vmatprep.subr.bf16.mxu1 %v1594_v8 }
  0x76   : > { %1455 = vmatpush3.bf16.msra.mxu0 %v1594_v8  ;;  %1504 = vmatpush3.bf16.msra.mxu1 %v1594_v8 }
  0x77   : > { %1456 = vmatprep.subr.bf16.mxu0 %v1595_v9  ;;  %1497 = vmatprep.subr.bf16.mxu1 %v1595_v9 }
  0x7a   : > { %1457 = vmatpush3.bf16.msra.mxu0 %v1595_v9  ;;  %1505 = vmatpush3.bf16.msra.mxu1 %v1595_v9 }
  0x7d   : > { %1459 = vmatmul.mubr.bf16.vlgmr.msra.gmra.mrb[0].mxu0 %v1597_v10  ;;  %1475 = vmatmul.mubr.bf16.vlgmr.msra.gmra.mrb[0].mxu1 %v1605_v11 }
  0x7e   : > { %1462 = vmatprep.mubr.bf16.mxu0 %v1598_v12  ;;  %1478 = vmatprep.mubr.bf16.mxu1 %v1606_v13 }
  0x85   : > { %1463 = vmatmul.mubr.bf16.gmra.mrb[4].mxu0 %v1599_v14  ;;  %1479 = vmatmul.mubr.bf16.gmra.mrb[4].mxu1 %v1607_v15 }
  0x86   : > { %1466 = vmatprep.mubr.bf16.mxu0 %v1600_v16  ;;  %1482 = vmatprep.mubr.bf16.mxu1 %v1608_v17 }
  0x8d   : > { %1467 = vmatmul.mubr.bf16.gmra.mrb[8].mxu0 %v1601_v18  ;;  %1483 = vmatmul.mubr.bf16.gmra.mrb[8].mxu1 %v1609_v19 }
  0x8e   : > { %1470 = vmatprep.mubr.bf16.mxu0 %v1602_v20  ;;  %1486 = vmatprep.mubr.bf16.mxu1 %v1610_v21 }
  0x95   : > { %1471 = vmatmul.mubr.bf16.gmra.mrb[12].mxu0 %v1603_v22  ;;  %1487 = vmatmul.mubr.bf16.gmra.mrb[12].mxu1 %v1611_v23 }
 0x150   : > { %v1460_v24 = vpop.f32.mrb[0].mxu0  ;;  %v2008_v25 = vpop.f32.mrb[0].mxu1 }
 0x151   : > { %v550_v26 = vpop.f32.mrb[1].mxu0  ;;  %v2010_v27 = vpop.f32.mrb[1].mxu1  ;;  %v976_v39 = vmul.f32 %v1460_v24, %v1460_v24 }
 0x152   : > { %v1461_v28 = vpop.f32.mrb[2].mxu0  ;;  %v2012_v29 = vpop.f32.mrb[2].mxu1  ;;  %v974_v30 = vmul.f32 %v550_v26, %v550_v26 }
 0x153   : > { %v1331_v31 = vpack.c.bf16 %v1461_v28, %v1460_v24  ;;  %v553_v32 = vpop.f32.mrb[3].mxu0  ;;  %v1371_v33 = vpack.c.bf16 %v2012_v29, %v2008_v25  ;;  %v2016_v34 = vpop.f32.mrb[3].mxu1  ;;  %v977_v42 = vmul.f32 %v1461_v28, %v1461_v28 }
 0x154   : > { %v1326_v35 = vpack.c.bf16 %v553_v32, %v550_v26  ;;  %v936_v36 = vadd.f32 %v553_v32, %v550_v26  ;;  %v975_v37 = vmul.f32 %v553_v32, %v553_v32  ;;  %v1366_v38 = vpack.c.bf16 %v2016_v34, %v2010_v27 }
 0x155   : > { %1403 = vst [vmem:[%s2022_s20 + $0x8] sm:$0xff] %v1331_v31   ;;  %1411 = vst [vmem:[%s2022_s20 + $0x48] sm:$0xff] %v1371_v33  }
 0x156   : > { %1327 = vst [vmem:[%s2022_s20] sm:$0xff] %v1326_v35   ;;  %v937_v40 = vadd.f32 %v1460_v24, %v936_v36  ;;  %v1006_v41 = vadd.f32 %v975_v37, %v974_v30  ;;  %1410 = vst [vmem:[%s2022_s20 + $0x40] sm:$0xff] %v1366_v38  }
 0x158   : > { %v1007_v43 = vadd.f32 %v1006_v41, %v976_v39  ;;  %v1464_v44 = vpop.f32.mrb[4].mxu0  ;;  %v938_v45 = vadd.f32 %v1461_v28, %v937_v40  ;;  %v2028_v46 = vpop.f32.mrb[4].mxu1 }
 0x159   : > { %v566_v47 = vpop.f32.mrb[5].mxu0  ;;  %v2030_v48 = vpop.f32.mrb[5].mxu1  ;;  %v980_v63 = vmul.f32 %v1464_v44, %v1464_v44 }
 0x15a   : > { %v939_v49 = vadd.f32 %v938_v45, %v566_v47  ;;  %v978_v50 = vmul.f32 %v566_v47, %v566_v47  ;;  %v1008_v51 = vadd.f32 %v1007_v43, %v977_v42  ;;  %v1465_v52 = vpop.f32.mrb[6].mxu0  ;;  %v2032_v53 = vpop.f32.mrb[6].mxu1 }
 0x15b   : > { %v1341_v54 = vpack.c.bf16 %v1465_v52, %v1464_v44  ;;  %v569_v55 = vpop.f32.mrb[7].mxu0  ;;  %v1381_v56 = vpack.c.bf16 %v2032_v53, %v2028_v46  ;;  %v2036_v57 = vpop.f32.mrb[7].mxu1  ;;  %v981_v2 = vmul.f32 %v1465_v52, %v1465_v52 }
 0x15c   : > { %v1009_v58 = vadd.f32 %v1008_v51, %v978_v50  ;;  %v1336_v59 = vpack.c.bf16 %v569_v55, %v566_v47  ;;  %v940_v60 = vadd.f32 %v939_v49, %v569_v55  ;;  %v979_v61 = vmul.f32 %v569_v55, %v569_v55 }
 0x15d   : > { %1405 = vst [vmem:[%s2022_s20 + $0x18] sm:$0xff] %v1341_v54   ;;  %1413 = vst [vmem:[%s2022_s20 + $0x58] sm:$0xff] %v1381_v56   ;;  %v1376_v62 = vpack.c.bf16 %v2036_v57, %v2030_v48 }
 0x15e   : > { %1404 = vst [vmem:[%s2022_s20 + $0x10] sm:$0xff] %v1336_v59   ;;  %v941_v0 = vadd.f32 %v1464_v44, %v940_v60  ;;  %v1010_v1 = vadd.f32 %v1009_v58, %v979_v61  ;;  %v990_v61 = vmul.f32 %v2010_v27, %v2010_v27 }
 0x15f   : > { %1412 = vst [vmem:[%s2022_s20 + $0x50] sm:$0xff] %v1376_v62  }
 0x160   : > { %v1011_v3 = vadd.f32 %v1010_v1, %v980_v63  ;;  %v1468_v4 = vpop.f32.mrb[8].mxu0  ;;  %v942_v5 = vadd.f32 %v1465_v52, %v941_v0  ;;  %v2044_v6 = vpop.f32.mrb[8].mxu1 }
 0x161   : > { %v582_v7 = vpop.f32.mrb[9].mxu0  ;;  %v2046_v8 = vpop.f32.mrb[9].mxu1  ;;  %v984_v23 = vmul.f32 %v1468_v4, %v1468_v4 }
 0x162   : > { %v943_v9 = vadd.f32 %v942_v5, %v582_v7  ;;  %v982_v10 = vmul.f32 %v582_v7, %v582_v7  ;;  %v1012_v11 = vadd.f32 %v1011_v3, %v981_v2  ;;  %v1469_v12 = vpop.f32.mrb[10].mxu0  ;;  %v2048_v13 = vpop.f32.mrb[10].mxu1 }
 0x163   : > { %v1351_v14 = vpack.c.bf16 %v1469_v12, %v1468_v4  ;;  %v585_v15 = vpop.f32.mrb[11].mxu0  ;;  %v1391_v16 = vpack.c.bf16 %v2048_v13, %v2044_v6  ;;  %v2052_v17 = vpop.f32.mrb[11].mxu1  ;;  %v985_v28 = vmul.f32 %v1469_v12, %v1469_v12 }
 0x164   : > { %v1013_v18 = vadd.f32 %v1012_v11, %v982_v10  ;;  %v1346_v19 = vpack.c.bf16 %v585_v15, %v582_v7  ;;  %v944_v20 = vadd.f32 %v943_v9, %v585_v15  ;;  %v983_v21 = vmul.f32 %v585_v15, %v585_v15 }
 0x165   : > { %1407 = vst [vmem:[%s2022_s20 + $0x28] sm:$0xff] %v1351_v14   ;;  %1415 = vst [vmem:[%s2022_s20 + $0x68] sm:$0xff] %v1391_v16   ;;  %v1386_v22 = vpack.c.bf16 %v2052_v17, %v2046_v8 }
 0x166   : > { %1406 = vst [vmem:[%s2022_s20 + $0x20] sm:$0xff] %v1346_v19   ;;  %v945_v24 = vadd.f32 %v1468_v4, %v944_v20  ;;  %v1014_v26 = vadd.f32 %v1013_v18, %v983_v21 }
 0x167   : > { %1414 = vst [vmem:[%s2022_s20 + $0x60] sm:$0xff] %v1386_v22  }
 0x168   : > { %v1015_v30 = vadd.f32 %v1014_v26, %v984_v23  ;;  %v1472_v31 = vpop.f32.mrb[12].mxu0  ;;  %v946_v32 = vadd.f32 %v1469_v12, %v945_v24  ;;  %v2060_v33 = vpop.f32.mrb[12].mxu1 }
 0x169   : > { %v598_v35 = vpop.f32.mrb[13].mxu0  ;;  %v2062_v36 = vpop.f32.mrb[13].mxu1  ;;  %v988_v54 = vmul.f32 %v1472_v31, %v1472_v31 }
 0x16a   : > { %v947_v37 = vadd.f32 %v946_v32, %v598_v35  ;;  %v986_v38 = vmul.f32 %v598_v35, %v598_v35  ;;  %v1016_v39 = vadd.f32 %v1015_v30, %v985_v28  ;;  %v1473_v40 = vpop.f32.mrb[14].mxu0  ;;  %v2066_v41 = vpop.f32.mrb[14].mxu1 }
 0x16b   : > { %v1361_v42 = vpack.c.bf16 %v1473_v40, %v1472_v31  ;;  %v601_v43 = vpop.f32.mrb[15].mxu0  ;;  %v1401_v44 = vpack.c.bf16 %v2066_v41, %v2060_v33  ;;  %v2070_v45 = vpop.f32.mrb[15].mxu1  ;;  %v989_v58 = vmul.f32 %v1473_v40, %v1473_v40 }
 0x16c   : > { %v1017_v47 = vadd.f32 %v1016_v39, %v986_v38  ;;  %v1356_v49 = vpack.c.bf16 %v601_v43, %v598_v35  ;;  %v948_v50 = vadd.f32 %v947_v37, %v601_v43  ;;  %v987_v51 = vmul.f32 %v601_v43, %v601_v43 }
 0x16d   : > { %1409 = vst [vmem:[%s2022_s20 + $0x38] sm:$0xff] %v1361_v42   ;;  %1417 = vst [vmem:[%s2022_s20 + $0x78] sm:$0xff] %v1401_v44   ;;  %v1396_v52 = vpack.c.bf16 %v2070_v45, %v2062_v36 }
 0x16e   : > { %1408 = vst [vmem:[%s2022_s20 + $0x30] sm:$0xff] %v1356_v49   ;;  %v949_v55 = vadd.f32 %v1472_v31, %v948_v50  ;;  %v1018_v56 = vadd.f32 %v1017_v47, %v987_v51 }
 0x16f   : > { %1416 = vst [vmem:[%s2022_s20 + $0x70] sm:$0xff] %v1396_v52  }
 0x170   : > { %v1019_v59 = vadd.f32 %v1018_v56, %v988_v54  ;;  %v950_v60 = vadd.f32 %v1473_v40, %v949_v55 }
 0x171   : > { %1683 = shalt.err (!%p1680_p5)
}
 0x172   : > { %s1684_s4 = scalar_lea.hbm %s2075_s9, 2048  ;;  %s1688_s7 = scalar_lea.hbm %s2213_s2, 4096 }
 0x173   : > { %p1685_p9 = scmp.ne.s32.totalorder %s2075_s9, %s1684_s4  ;;  %p1689_p3 = scmp.lt.u32.totalorder %s2075_s9, %s2213_s2 }
 0x174   : > { %p1690_p7 = scmp.lt.u32.totalorder %s1688_s7, %s1684_s4  ;;  %p1692_p4 = scmp.lt.u32.totalorder %s1684_s4, %s2075_s9 }
 0x175   : > { %p1686_p1 = pnand %p1685_p9, %p1917_p10 }
 0x176   : > { %p1691_p13 = por %p1690_p7, %p1689_p3 }
 0x177   : > { %p1687_p2 = pneg %p1686_p1 }
 0x178   : > { %p1693_p6 = por %p1692_p4, %p1691_p13 }
 0x17a   : > { %p1694_p8 = pnand %p1693_p6, %p1687_p2 }
 0x17c   : > { %1697 = shalt.err (!%p1694_p8)
}
 0x17d   : > { %s1795_s22 = smov 64   ;;  %s1796_s10 = smov 4   ;;  %v951_v62 = vadd.f32 %v950_v60, %v2010_v27  ;;  %v1020_v63 = vadd.f32 %v1019_v59, %v989_v58  ;;  %v991_v2 = vmul.f32 %v2016_v34, %v2016_v34  ;;  %v992_v3 = vmul.f32 %v2008_v25, %v2008_v25 }
 0x17e   : > { %1512 = dma.vmem_to_hbm [thread:$0]  (%p1917_p10), %s2077_s24, 2048, %s2075_s9, %s1045_s18, %s1795_s22, %s1795_s22, %s1796_s10   ;;  %v993_v7 = vmul.f32 %v2012_v29, %v2012_v29  ;;  %v994_v27 = vmul.f32 %v2030_v48, %v2030_v48  ;;  %v995_v15 = vmul.f32 %v2036_v57, %v2036_v57  ;;  %v999_v24 = vmul.f32 %v2052_v17, %v2052_v17 }
 0x17f   : > { %v1021_v0 = vadd.f32 %v1020_v63, %v990_v61  ;;  %v952_v1 = vadd.f32 %v951_v62, %v2016_v34  ;;  %v1004_v38 = vmul.f32 %v2060_v33, %v2060_v33  ;;  %v1005_v40 = vmul.f32 %v2066_v41, %v2066_v41  ;;  %s1225_s24 = sshll.u32 %s1976_s30, 3  ;;  %s1286_s11 = sshll.u32 %s1780_s15, 7 }
 0x180   : > { %s251_s9 = scalar_lea.vmem [#allocation9], %s1225_s24  ;;  %s2162_s26 = scalar_lea.hbm %s2214_s3, %s1286_s11 }
 0x181   : > { %v953_v4 = vadd.f32 %v2008_v25, %v952_v1  ;;  %v1022_v5 = vadd.f32 %v1021_v0, %v991_v2  ;;  %v996_v25 = vmul.f32 %v2028_v46, %v2028_v46  ;;  %s1081_s18 = sshll.u32 %s251_s9, 4  ;;  %s1050_s21 = scalar_lea.sflag [#allocation10], %s1976_s30  ;;  %s2164_s18 = int_to_ptr.vmem [resolvable:$true] %s1081_s18 }
 0x182   : > { %s1698_s4 = scalar_lea.vmem %s2164_s18, 128  ;;  %s1797_s15 = smov [#allocation9]  }
 0x183   : > { %v1023_v9 = vadd.f32 %v1022_v5, %v992_v3  ;;  %v954_v10 = vadd.f32 %v2012_v29, %v953_v4  ;;  %v997_v29 = vmul.f32 %v2032_v53, %v2032_v53  ;;  %p1699_p12 = scmp.ne.s32.totalorder %s2164_s18, %s1698_s4  ;;  %s1702_s6 = sshll.u32 %s1797_s15, 4  ;;  %s1703_s6 = int_to_ptr.vmem [resolvable:$false] %s1702_s6 }
 0x184   : > { %s1704_s29 = scalar_lea.vmem %s1703_s6, 256  ;;  %p1705_p5 = scmp.lt.s32.totalorder %s2164_s18, %s1703_s6 }
 0x185   : > { %v955_v11 = vadd.f32 %v954_v10, %v2030_v48  ;;  %v1024_v12 = vadd.f32 %v1023_v9, %v993_v7  ;;  %v998_v48 = vmul.f32 %v2046_v8, %v2046_v8  ;;  %p1700_p11 = pnand %p1699_p12, %p1917_p10  ;;  %p1706_p9 = scmp.lt.s32.totalorder %s1704_s29, %s1698_s4 }
 0x187   : > { %v1025_v14 = vadd.f32 %v1024_v12, %v994_v27  ;;  %v956_v34 = vadd.f32 %v955_v11, %v2036_v57  ;;  %p1701_p0 = pneg %p1700_p11  ;;  %p1707_p1 = por %p1706_p9, %p1705_p5 }
 0x189   : > { %v957_v16 = vadd.f32 %v2028_v46, %v956_v34  ;;  %v1026_v18 = vadd.f32 %v1025_v14, %v995_v15  ;;  %v1000_v46 = vmul.f32 %v2044_v6, %v2044_v6  ;;  %p1708_p2 = pnand %p1707_p1, %p1701_p0 }
 0x18b   : > { %v1027_v19 = vadd.f32 %v1026_v18, %v996_v25  ;;  %v958_v20 = vadd.f32 %v2032_v53, %v957_v16  ;;  %v1001_v53 = vmul.f32 %v2048_v13, %v2048_v13 }
 0x18d   : > { %v959_v21 = vadd.f32 %v958_v20, %v2046_v8  ;;  %v1028_v22 = vadd.f32 %v1027_v19, %v997_v29  ;;  %v1002_v8 = vmul.f32 %v2062_v36, %v2062_v36 }
 0x18f   : > { %v1029_v23 = vadd.f32 %v1028_v22, %v998_v48  ;;  %v960_v57 = vadd.f32 %v959_v21, %v2052_v17 }
 0x191   : > { %v961_v26 = vadd.f32 %v2044_v6, %v960_v57  ;;  %v1030_v28 = vadd.f32 %v1029_v23, %v999_v24  ;;  %v1003_v6 = vmul.f32 %v2070_v45, %v2070_v45 }
 0x193   : > { %v1031_v30 = vadd.f32 %v1030_v28, %v1000_v46  ;;  %v962_v31 = vadd.f32 %v2048_v13, %v961_v26 }
 0x195   : > { %v963_v32 = vadd.f32 %v962_v31, %v2062_v36  ;;  %v1032_v35 = vadd.f32 %v1031_v30, %v1001_v53 }
 0x197   : > { %v1033_v17 = vadd.f32 %v1032_v35, %v1002_v8  ;;  %v964_v37 = vadd.f32 %v963_v32, %v2070_v45 }
 0x199   : > { %v965_v39 = vadd.f32 %v2060_v33, %v964_v37  ;;  %v1034_v13 = vadd.f32 %v1033_v17, %v1003_v6 }
 0x19b   : > { %v966_v42 = vadd.f32 %v2066_v41, %v965_v39  ;;  %v1035_v36 = vadd.f32 %v1034_v13, %v1004_v38 }
 0x19d   : > { %v967_v43 = vrot.slane %v966_v42, 4  ;;  %v1036_v44 = vadd.f32 %v1035_v36, %v1005_v40 }
 0x19f   : > { %v968_v47 = vadd.f32 %v967_v43, %v966_v42  ;;  %v1037_v49 = vrot.slane %v1036_v44, 4 }
 0x1a1   : > { %v969_v50 = vrot.slane %v968_v47, 2  ;;  %v1038_v45 = vadd.f32 %v1037_v49, %v1036_v44 }
 0x1a3   : > { %v970_v51 = vadd.f32 %v969_v50, %v968_v47  ;;  %v1039_v52 = vrot.slane %v1038_v45, 2 }
 0x1a5   : > { %v971_v33 = vrot.slane %v970_v51, 1  ;;  %v1040_v54 = vadd.f32 %v1039_v52, %v1038_v45 }
 0x1a7   : > { %v972_v55 = vadd.f32 %v971_v33, %v970_v51  ;;  %v1041_v56 = vrot.slane %v1040_v54, 1 }
 0x1a9   : > { %973 = vst [vmem:[%s251_s9] sm:$0x1] %v972_v55  ;;  %v1042_v41 = vadd.f32 %v1041_v56, %v1040_v54 }
 0x1ab   : > { %1043 = vst [vmem:[%s251_s9 + $0x1] sm:$0x1] %v1042_v41 }
 0x1ac   : > { %1711 = shalt.err (!%p1708_p2)
}
 0x1ad   : > { %s1712_s30 = scalar_lea.hbm %s2162_s26, 128  ;;  %s1716_s20 = scalar_lea.hbm %s2214_s3, 256 }
 0x1ae   : > { %p1713_p3 = scmp.ne.s32.totalorder %s2162_s26, %s1712_s30  ;;  %p1717_p4 = scmp.lt.u32.totalorder %s2162_s26, %s2214_s3 }
 0x1af   : > { %p1718_p6 = scmp.lt.u32.totalorder %s1716_s20, %s1712_s30  ;;  %p1720_p12 = scmp.lt.u32.totalorder %s1712_s30, %s2162_s26 }
 0x1b0   : > { %p1714_p7 = pnand %p1713_p3, %p1917_p10 }
 0x1b1   : > { %p1719_p8 = por %p1718_p6, %p1717_p4 }
 0x1b2   : > { %p1715_p13 = pneg %p1714_p7 }
 0x1b3   : > { %p1721_p11 = por %p1720_p12, %p1719_p8 }
 0x1b5   : > { %p1722_p0 = pnand %p1721_p11, %p1715_p13 }
 0x1b7   : > { %1725 = shalt.err (!%p1722_p0)
}
 0x1b8   : > { %1513 = dma.vmem_to_hbm [thread:$0]  (%p1917_p10), %s2164_s18, 128, %s2162_s26, %s1050_s21  }
 0x1b9 PF: > { %s1093_s24 = sand.u32 1, %s1768_s12   ;;  %p2232_p5 = scmp.ne.s32.totalorder %s2222_s23, 0 }
 0x1ba   : > { %p2233_p9 = scmp.ge.s32.totalorder %s1788_s17, 2  ;;  %s1094_s11 = scalar_lea.sflag [#allocation5], %s1093_s24 }
 0x1bc   : > { %p1525_p1 = pnand %p2233_p9, %p2232_p5 }
 0x1be   : > { %1759 = dma.done.wait (!%p1525_p1), %s1094_s11, 2048  }
 0x1bf   : > { %1761 = vsyncadd (!%p1525_p1), %s1094_s11, 4294965248  ;;  %s1103_s9 = scalar_lea.sflag [#allocation10], %s1093_s24 }
 0x1c0   : > { %1763 = dma.done.wait (!%p1525_p1), %s1103_s9, 128  }
 0x1c1   : > { %1765 = vsyncadd (!%p1525_p1), %s1103_s9, 4294967168  ;;  %s24_s17 = sadd.s32 1, %s1788_s17   ;;  %s2234_s12 = smov %s1772_s13 }
 0x1c2   : > { %p21_p2 = scmp.ge.s32.totalorder %s24_s17, 4   ;;  %s2235_s13 = smov %s1776_s14 }
 0x1c3   : > { %s2236_s14 = smov %s1926_s5  ;;  %s2237_s15 = smov %s1784_s16 }
 0x1c4   : > { %s2238_s16 = smov %s2240_s28  ;;  %23 = sbr.rel (!%p21_p2) target bundleno = 9 (0x9), region = 103 }
 0x1cb   :  { %1108 = vsyncpa [#allocation4], 1 }
 0x1cc   :  { %1110 = vsyncpa [#allocation4 + $0x1], 1 }
 0x1cd   :  { %1111 = vsyncpa [#allocation7], 1 }
 0x1ce   :  { %1112 = vsyncpa [#allocation5], 1 }
 0x1cf   :  { %1114 = vsyncpa [#allocation5 + $0x1], 1 }
 0x1d0   :  { %1115 = vsyncpa [#allocation10], 1 }
 0x1d1   :  { %1117 = vsyncpa [#allocation10 + $0x1], 1 }

</bundles_post_ra>
